<compile_context>
chip_gen: v6e
topology: v6e:2x2x1
jax: 0.10.0
libtpu: 0.0.40
codegen_flags: <defaults>
</compile_context>

<pallas_src>
import jax
import jax.numpy as jnp
from jax.experimental import pallas as pl
from jax.experimental.pallas import tpu as pltpu


# --------------------------------------------------------------------------
# Kernels
# --------------------------------------------------------------------------

def _prologue_kernel(ids_ref, emb_ref, w1_ref, b1_ref, h_ref):
    """h = tanh(emb[ids] @ w1 + b1).  Single invocation; everything resident.

    ids: [M, 1]     int32
    emb: [n_emb, H] bf16
    w1:  [H, P]     bf16
    b1:  [1, P]     f32
    h:   [M, P]     f32
    """
    ids = ids_ref[...]
    m = ids.shape[0]
    n_emb = emb_ref.shape[0]
    # Embedding gather as a one-hot matmul (MXU-friendly, bit-exact rows).
    onehot = (ids == jax.lax.broadcasted_iota(jnp.int32, (m, n_emb), 1))
    tok = jnp.dot(onehot.astype(emb_ref.dtype), emb_ref[...],
                  preferred_element_type=jnp.float32)          # [M, H] f32 (exact)
    h = jnp.dot(tok.astype(w1_ref.dtype), w1_ref[...],
                preferred_element_type=jnp.float32)            # [M, P] f32
    h_ref[...] = jnp.tanh(h + b1_ref[...])                     # stays f32


def _stream_kernel(h_ref, w2_ref, b2_ref, o_ref):
    """One output-column tile:  o = h @ w2_tile + b2_tile.

    h:  [M, P]  f32  (constant block -> stays resident across the column grid)
    w2: [P, tn] bf16 (streamed, double-buffered by the BlockSpec pipeline)
    b2: [1, tn] f32  (streamed)
    o:  [M, tn] f32
    """
    o = jnp.dot(h_ref[...], w2_ref[...].astype(jnp.float32),
                preferred_element_type=jnp.float32) + b2_ref[...]
    o_ref[...] = o.astype(o_ref.dtype)


# --------------------------------------------------------------------------
# Host-side helpers
# --------------------------------------------------------------------------

def _round_up(x, mult):
    return ((x + mult - 1) // mult) * mult


def _vmem_budget_bytes():
    """Per-generation VMEM budget (leaves headroom for Mosaic internal scratch)."""
    try:
        cap = int(pltpu.get_tpu_info().vmem_capacity_bytes)
    except Exception:
        cap = 64 * 1024 * 1024   # v7x per-TensorCore VMEM (smallest generation)
    return max(16 * 1024 * 1024, int(cap * 0.75))


def _pick_tn(out_dim_pad, p, m_pad, budget):
    """Largest multiple of 128 dividing out_dim_pad whose working set fits."""
    cand = min(out_dim_pad, 8192)
    cand -= cand % 128
    while cand >= 128:
        if out_dim_pad % cand == 0:
            need = (2 * p * cand * 2          # w2 double buffer (bf16)
                    + 2 * cand * 4            # b2 double buffer (f32)
                    + 2 * m_pad * cand * 4    # output double buffer (f32)
                    + 2 * m_pad * p * 4)      # resident h (f32)
            if need <= budget:
                return cand
        cand -= 128
    return 128


# --------------------------------------------------------------------------
# Forward
# --------------------------------------------------------------------------

def prefix_encoder_forward(prefix, emb_table, w1, b1, w2, b2):
    """prefix: [bsz, plen] int32 ids.  Returns [bsz, plen, n_layers*2*hidden] f32."""
    bsz, plen = prefix.shape
    n_emb, hidden = emb_table.shape
    pfx_hidden = w1.shape[1]
    out_dim = w2.shape[1]

    # HBM-resident parameters in bf16 (halves the dominant w2 stream); biases f32.
    emb_bf = emb_table.astype(jnp.bfloat16)
    w1_bf = w1.astype(jnp.bfloat16)
    w2_bf = w2.astype(jnp.bfloat16)
    b1_f = b1.astype(jnp.float32).reshape(1, pfx_hidden)
    b2_f = b2.astype(jnp.float32).reshape(1, out_dim)

    # Flatten token ids; pad rows to a sublane multiple (single aligned row tile).
    m = bsz * plen
    m_pad = _round_up(m, 8)
    ids = prefix.reshape(-1, 1).astype(jnp.int32)
    if m_pad != m:
        ids = jnp.pad(ids, ((0, m_pad - m), (0, 0)))

    # Pad out_dim to a lane multiple so every column tile is lane-dense.
    out_dim_pad = _round_up(out_dim, 128)
    if out_dim_pad != out_dim:
        w2_bf = jnp.pad(w2_bf, ((0, 0), (0, out_dim_pad - out_dim)))
        b2_f = jnp.pad(b2_f, ((0, 0), (0, out_dim_pad - out_dim)))

    vmem_budget = _vmem_budget_bytes()

    # ---- Stage 1: h = tanh(emb[ids] @ w1 + b1)  (tiny, one kernel invocation).
    h = pl.pallas_call(
        _prologue_kernel,
        out_shape=jax.ShapeDtypeStruct((m_pad, pfx_hidden), jnp.float32),
        compiler_params=pltpu.CompilerParams(vmem_limit_bytes=vmem_budget),
    )(ids, emb_bf, w1_bf, b1_f)

    # ---- Stage 2: stream w2 over column tiles; single row tile -> w2 read once.
    tn = _pick_tn(out_dim_pad, pfx_hidden, m_pad, vmem_budget)
    grid = (out_dim_pad // tn,)

    out = pl.pallas_call(
        _stream_kernel,
        out_shape=jax.ShapeDtypeStruct((m_pad, out_dim_pad), jnp.float32),
        grid=grid,
        in_specs=[
            pl.BlockSpec((m_pad, pfx_hidden), lambda j: (0, 0)),    # h (resident)
            pl.BlockSpec((pfx_hidden, tn), lambda j: (0, j)),       # w2 (streamed)
            pl.BlockSpec((1, tn), lambda j: (0, j)),                # b2 (streamed)
        ],
        out_specs=pl.BlockSpec((m_pad, tn), lambda j: (0, j)),
        compiler_params=pltpu.CompilerParams(
            # Column axis is independent -> split over TensorCores on v7x,
            # so each core streams only its half of w2.
            dimension_semantics=("parallel",),
            vmem_limit_bytes=vmem_budget,
        ),
    )(h, w2_bf, b2_f)

    # Drop padding only if it was added (no needless copy in the common case).
    if m_pad != m or out_dim_pad != out_dim:
        out = out[:m, :out_dim]
    return out.reshape(bsz, plen, out_dim)


# --------------------------------------------------------------------------
# Pure-JAX reference (mirrors the kernel's bf16 weight storage, f32 math)
# --------------------------------------------------------------------------

def reference_forward(prefix, emb_table, w1, b1, w2, b2):
    emb = emb_table.astype(jnp.bfloat16).astype(jnp.float32)
    w1f = w1.astype(jnp.bfloat16).astype(jnp.float32)
    w2f = w2.astype(jnp.bfloat16).astype(jnp.float32)
    tok = jnp.take(emb, prefix.reshape(-1), axis=0)
    h = jnp.tanh(tok @ w1f + b1.reshape(1, -1))
    o = h @ w2f + b2.reshape(1, -1)
    return o.reshape(prefix.shape[0], prefix.shape[1], -1)


if __name__ == "__main__":
    # Small config consistent with the module (prefix_projection=True branch).
    config = {
        "prefix_len": 8,
        "n_cls": 4,
        "hidden_size": 32,
        "num_hidden_layers": 2,
        "prefix_projection": True,
        "prefix_hidden_size": 64,
    }
    bsz = 2
    plen = config["prefix_len"]
    n_emb = config["prefix_len"] * config["n_cls"]           # 32
    hidden = config["hidden_size"]                           # 32
    pfx_hidden = config["prefix_hidden_size"]                # 64
    out_dim = config["num_hidden_layers"] * 2 * hidden       # 128

    key = jax.random.PRNGKey(0)
    k_emb, k_w1, k_b1, k_w2, k_b2, k_idx = jax.random.split(key, 6)

    # Deterministic synthetic parameters (shapes match nn.Embedding / nn.Linear).
    emb_table = jax.random.normal(k_emb, (n_emb, hidden), jnp.float32) * 0.02
    w1 = jax.random.normal(k_w1, (hidden, pfx_hidden), jnp.float32) * 0.05
    b1 = jax.random.normal(k_b1, (1, pfx_hidden), jnp.float32) * 0.01
    w2 = jax.random.normal(k_w2, (pfx_hidden, out_dim), jnp.float32) * 0.05
    b2 = jax.random.normal(k_b2, (1, out_dim), jnp.float32) * 0.01

    # Input: [bsz, prefix_len] integer ids in [0, n_emb).
    prefix = jax.random.randint(k_idx, (bsz, plen), 0, n_emb, jnp.int32)

    out = prefix_encoder_forward(prefix, emb_table, w1, b1, w2, b2)
    out = jax.block_until_ready(out)

    ref = reference_forward(prefix, emb_table, w1, b1, w2, b2)
    assert out.shape == (bsz, plen, out_dim), out.shape
    assert jnp.allclose(out, ref, atol=2e-3, rtol=2e-2), "mismatch vs reference"

    print("KERNEL_OK")
</pallas_src>

<mosaic_0001>
module attributes {stable_mosaic.version = 11 : i64} {
  func.func @_prologue_kernel(%arg0: memref<16x1xi32, #tpu.memory_space<vmem>>, %arg1: memref<32x32xbf16, #tpu.memory_space<vmem>>, %arg2: memref<32x64xbf16, #tpu.memory_space<vmem>>, %arg3: memref<1x64xf32, #tpu.memory_space<vmem>>, %arg4: memref<16x64xf32, #tpu.memory_space<vmem>>) attributes {dimension_semantics = [], scalar_prefetch = 0 : i64, scratch_operands = 0 : i64, tpu.core_type = #tpu.core_type<tc>} {
    %c0 = arith.constant 0 : index
    %c0_0 = arith.constant 0 : index
    %0 = vector.load %arg0[%c0, %c0_0] : memref<16x1xi32, #tpu.memory_space<vmem>>, vector<16x1xi32>
    %1 = tpu.iota {dimensions = array<i32: 1>} : vector<16x32xi32>
    %2 = vector.broadcast %0 : vector<16x1xi32> to vector<16x32xi32>
    %3 = arith.cmpi eq, %2, %1 : vector<16x32xi32>
    %4 = arith.extui %3 : vector<16x32xi1> to vector<16x32xi32>
    %5 = arith.sitofp %4 : vector<16x32xi32> to vector<16x32xf32>
    %6 = arith.truncf %5 : vector<16x32xf32> to vector<16x32xbf16>
    %c0_1 = arith.constant 0 : index
    %c0_2 = arith.constant 0 : index
    %7 = vector.load %arg1[%c0_1, %c0_2] : memref<32x32xbf16, #tpu.memory_space<vmem>>, vector<32x32xbf16>
    %cst = arith.constant dense<0.000000e+00> : vector<16x32xf32>
    %8 = tpu.matmul %6, %7, %cst {dimension_numbers = #tpu.dot_dimension_numbers<[1], [0], [0], [1], [0, 0, 1, 1], [], []>} : vector<16x32xbf16>, vector<32x32xbf16>, vector<16x32xf32> -> vector<16x32xf32>
    %9 = arith.truncf %8 : vector<16x32xf32> to vector<16x32xbf16>
    %c0_3 = arith.constant 0 : index
    %c0_4 = arith.constant 0 : index
    %10 = vector.load %arg2[%c0_3, %c0_4] : memref<32x64xbf16, #tpu.memory_space<vmem>>, vector<32x64xbf16>
    %cst_5 = arith.constant dense<0.000000e+00> : vector<16x64xf32>
    %11 = tpu.matmul %9, %10, %cst_5 {dimension_numbers = #tpu.dot_dimension_numbers<[1], [0], [0], [1], [0, 0, 1, 1], [], []>} : vector<16x32xbf16>, vector<32x64xbf16>, vector<16x64xf32> -> vector<16x64xf32>
    %c0_6 = arith.constant 0 : index
    %c0_7 = arith.constant 0 : index
    %12 = vector.load %arg3[%c0_6, %c0_7] : memref<1x64xf32, #tpu.memory_space<vmem>>, vector<1x64xf32>
    %13 = vector.broadcast %12 : vector<1x64xf32> to vector<16x64xf32>
    %14 = arith.addf %11, %13 : vector<16x64xf32>
    %15 = math.tanh %14 : vector<16x64xf32>
    %c0_8 = arith.constant 0 : index
    %c0_9 = arith.constant 0 : index
    %16 = vector.load %arg4[%c0_8, %c0_9] : memref<16x64xf32, #tpu.memory_space<vmem>>, vector<16x64xf32>
    tpu.vector_store %arg4[%c0_8, %c0_9], %15 {strides = array<i32>} : memref<16x64xf32, #tpu.memory_space<vmem>>, vector<16x64xf32>,
    return
  }
}

</mosaic_0001>

<bundles_post_ra>
// kernel: tpu_custom_call.1
= control target key start
LH: loop header
LB: loop body
LE: loop exit
PB: predicated region body
PF: predicated region fallthrough
CT: control target
= control target key end

     0   :  { %9 = vsyncpa [#allocation3], 0  ;;  %s349_s0 = inlined_call_operand.vmem [shape: s32[16,1], index: 0, kind: input, shape index: {}]   ;;  %s350_s1 = inlined_call_operand.vmem [shape: bf16[32,32], index: 1, kind: input, shape index: {}]   ;;  %s351_s2 = inlined_call_operand.hbm [shape: bf16[32,64], index: 2, kind: input, shape index: {}]   ;;  %s352_s3 = inlined_call_operand.vmem [shape: f32[1,64], index: 3, kind: input, shape index: {}]   ;;  %s353_s4 = inlined_call_operand.hbm [shape: f32[16,64], index: 4, kind: output, shape index: {}]  }
   0x1   :  { %10 = vsyncpa [#allocation4], 0  ;;  %s294_s15 = smov [#allocation2]  }
   0x2   :  { %s20_s16 = sshll.u32 %s294_s15, 4  ;;  %s21_s16 = int_to_ptr.vmem [resolvable:$true] %s20_s16 }
   0x3   :  { %s258_s17 = scalar_lea.vmem %s21_s16, 256  ;;  %p263_p1 = scmp.lt.s32.totalorder %s21_s16, %s21_s16 }
   0x4   :  { %p259_p0 = scmp.ne.s32.totalorder %s21_s16, %s258_s17  ;;  %p264_p2 = scmp.lt.s32.totalorder %s258_s17, %s258_s17 }
   0x6   :  { %p265_p3 = por %p264_p2, %p263_p1 }
   0x8   :  { %p266_p4 = pnand %p265_p3, %p259_p0 }
   0xa   :  { %269 = shalt.err (!%p266_p4)
}
   0xb   :  { %s295_s18 = smov 64   ;;  %s296_s19 = smov 4  }
   0xc   :  { %26 = dma.hbm_to_vmem [thread:$0]  %s351_s2, 256, %s21_s16, [#allocation3], %s295_s18, %s295_s18, %s296_s19  }
   0xd   :  { %290 = dma.done.wait [#allocation3], 256  }
   0xe   :  { %291 = vsyncadd [#allocation3], 4294967040  ;;  %v297_v0 = vmov 0   ;;  %v298_v1 = vmov 0.0   ;;  %v33_v2 = vld [vmem:[%s349_s0] sm:$0xff]  ;;  %v242_v3 = vld [vmem:[%s350_s1 + $0x8] sm:$0xff]   ;;  %v35_v6 = vlaneseq }
   0xf   :  { %241 = vset.pattern.permute.xlu0 %v297_v0  ;;  %216 = vmatprep.subr.bf16.mxu0 %v298_v1  ;;  %v34_v4 = vld [vmem:[%s349_s0 + $0x8] sm:$0xff]  ;;  %v243_v5 = vld [vmem:[%s350_s1] sm:$0xff]   ;;  %vm299_vm0 = vmmov 0   ;;  %vm66_vm3 = vcmask 261120   ;;  %vm181_vm4 = vcmask 523264   ;;  %s300_s29 = smov [#allocation5]  }
  0x10   :  { %224 = vmatprep.subr.bf16.mxu1 %v298_v1  ;;  %38 = vperm.xlu0 %241, %v33_v2   ;;  %v36_v7 = vand.u32 127, %v35_v6  ;;  %v244_v13 = vld [vmem:[#allocation2 + $0x8] sm:$0xff]   ;;  %v245_v14 = vld [vmem:[#allocation2] sm:$0xff]   ;;  %s189_s30 = sshll.u32 %s300_s29, 4  ;;  %s190_s30 = int_to_ptr.vmem [resolvable:$true] %s189_s30 }
  0x11   :  { %217 = vmatpush3.bf16.msra.mxu0 %v242_v3  ;;  %220 = vmatprep.mubr.msk.bf16.mxu0 %vm299_vm0, %v298_v1  ;;  %v206_v20 = vld [vmem:[%s352_s3] ss:$0 sm:$0xff]  ;;  %s270_s5 = scalar_lea.vmem %s190_s30, 256  ;;  %p275_p6 = scmp.lt.s32.totalorder %s190_s30, %s190_s30 }
  0x12   :  { %218 = vmatprep.subr.bf16.mxu0 %v298_v1  ;;  %228 = vmatprep.mubr.msk.bf16.mxu1 %vm299_vm0, %v298_v1  ;;  %p271_p5 = scmp.ne.s32.totalorder %s190_s30, %s270_s5  ;;  %p276_p7 = scmp.lt.s32.totalorder %s270_s5, %s270_s5 }
  0x13   :  { %225 = vmatpush3.bf16.msra.mxu1 %v244_v13 }
  0x14   :  { %41 = vperm.xlu0 %241, %v34_v4   ;;  %226 = vmatprep.subr.bf16.mxu1 %v298_v1  ;;  %p277_p8 = por %p276_p7, %p275_p6 }
  0x15   :  { %219 = vmatpush3.bf16.msra.mxu0 %v243_v5 }
  0x16   :  { %p278_p9 = pnand %p277_p8, %p271_p5 }
  0x17   :  { %227 = vmatpush3.bf16.msra.mxu1 %v245_v14 }
  0x8b   :  { %v39_v8 = vpop.permute.xlu0 %38 }
  0x8c   :  { %vm43_vm1 = vcmp.eq.s32.totalorder %v39_v8, %v36_v7 }
  0x8d   :  { %v201_v10 = vsel %vm43_vm1, 1.0, %v298_v1 }
  0x8f   :  { %v42_v9 = vpop.permute.xlu0 %41 }
  0x90   :  { %vm44_vm2 = vcmp.eq.s32.totalorder %v42_v9, %v36_v7 }
  0x91   :  { %v202_v11 = vsel %vm44_vm2, 1.0, %v298_v1 }
  0x92   :  { %v49_v12 = vpack.c.bf16 %v202_v11, %v201_v10 }
  0x94   :  { %221 = vmatmul.mubr.msk.bf16.vlgmr.msra.gmra.mxu0 %vm66_vm3, %v49_v12 }
 0x154   :  { %v104_v15 = vpop.f32.mrf.mxu0 }
 0x156   :  { %v222_v16 = vpop.f32.mrf.mxu0 }
 0x158   :  { %v107_v17 = vpop.f32.mrf.mxu0 }
 0x159   :  { %v111_v18 = vpack.c.bf16 %v107_v17, %v104_v15 }
 0x15a   :  { %v223_v19 = vpop.f32.mrf.mxu0 }
 0x15b   :  { %229 = vmatmul.mubr.msk.bf16.vlgmr.msra.gmra.mxu1 %vm66_vm3, %v111_v18 }
 0x21b   :  { %v172_v21 = vpop.f32.mrf.mxu1 }
 0x21c   :  { %v173_v22 = vadd.f32 %v206_v20, %v172_v21 }
 0x21d   :  { %v230_v23 = vpop.f32.mrf.mxu1 }
 0x21e   :  { %246 = vtanh.f32 %v173_v22 }
 0x21f   :  { %v175_v24 = vpop.f32.mrf.mxu1 }
 0x220   :  { %v176_v25 = vadd.f32 %v206_v20, %v175_v24 }
 0x221   :  { %v231_v26 = vpop.f32.mrf.mxu1 }
 0x222   :  { %248 = vtanh.f32 %v176_v25 }
 0x22b   :  { %v247_v27 = vpop.eup %246 }
 0x22c   :  { %182 = vst.msk [vmem:[#allocation5] sm:$0xff] %vm181_vm4, %v247_v27 }
 0x22f   :  { %v249_v28 = vpop.eup %248 }
 0x230   :  { %183 = vst.msk [vmem:[#allocation5 + $0x8] sm:$0xff] %vm181_vm4, %v249_v28 }
 0x231   :  { %281 = shalt.err (!%p278_p9)
}
 0x232   :  { %s301_s3 = smov 128   ;;  %s302_s6 = smov 8  }
 0x233   :  { %195 = dma.vmem_to_hbm [thread:$0]  %s190_s30, 256, %s353_s4, [#allocation4], %s301_s3, %s301_s3, %s302_s6  }
 0x234   :  { %292 = dma.done.wait [#allocation4], 256  }
 0x235   :  { %293 = vsyncadd [#allocation4], 4294967040 }
 0x236   :  { %199 = vsyncpa [#allocation3], 1 }
 0x237   :  { %200 = vsyncpa [#allocation4], 1 }

</bundles_post_ra>
